<compile_context>
chip_gen: v7x
topology: tpu7x:2x2x1
jax: 0.10.0
libtpu: 0.0.40
codegen_flags: <defaults>
</compile_context>

<pallas_src>
import jax
import jax.numpy as jnp
from jax import lax
from jax.experimental import pallas as pl
from jax.experimental.pallas import tpu as pltpu

_LANES = 128
_IN_FEATURES = 2


def _linear_kernel(params_ref, x_ref, o_ref):
    # params_ref: SMEM (3,)        -> [w0, w1, b]
    # x_ref:      VMEM (rb, 256)   row-major interleaved [x0, x1, x0, x1, ...]
    # o_ref:      VMEM (rb, 128)   lane-dense results; point p = row*128 + lane
    w0 = params_ref[0]
    w1 = params_ref[1]
    b = params_ref[2]

    # De-interleave + weight application fused into one small MXU matmul:
    #   sel[c, k] = w0 if c == 2k, w1 if c == 2k + 1, else 0     (256, 128)
    # Building sel from iotas is ~0.1M VPU element-ops per step, hidden under
    # the block DMA (the kernel is HBM-bandwidth bound).
    r = lax.broadcasted_iota(jnp.int32, (2 * _LANES, _LANES), 0)
    c = lax.broadcasted_iota(jnp.int32, (2 * _LANES, _LANES), 1)
    sel = jnp.where(r == 2 * c, w0, 0.0)
    sel = jnp.where(r == 2 * c + 1, w1, sel)

    # f32 compute on all generations (v5e has no bf16 VALU); for f32 inputs the
    # astype is a no-op.  (For bf16 inputs one could instead cast sel to bf16.)
    x = x_ref[...].astype(jnp.float32)
    acc = jnp.dot(x, sel, preferred_element_type=jnp.float32)
    o_ref[...] = (acc + b).astype(o_ref.dtype)


def linear_separator(x, weight, bias, *, block_rows=2048):
    """Forward of nn.Linear(2, 1): x @ weight.T + bias.

    x:      [N, 2]   (any float dtype; compute is f32)
    weight: [1, 2]   (PyTorch layout)
    bias:   [1]
    returns [N, 1]   with dtype == x.dtype (nn.Linear semantics)
    """
    n, in_f = x.shape
    assert in_f == _IN_FEATURES and weight.shape == (1, 2) and bias.shape == (1,)
    out_dtype = x.dtype

    # Each slab row packs 128 consecutive points: 256 interleaved input lanes
    # -> 128 output lanes.  Round the row block to a multiple of 8 (block
    # (8,128) constraint) and clamp it to what the batch actually needs.
    rows = pl.cdiv(n, _LANES)
    rows_min = max(8, ((rows + 7) // 8) * 8)
    rb = min(max(8, (block_rows // 8) * 8), rows_min)
    rows_pad = pl.cdiv(rows, rb) * rb
    n_pad = rows_pad * _LANES

    # NO transpose: pad (copy only if N needs padding) then a row-major
    # preserving reshape (free) into the (rows_pad, 256) slab.
    x_slab = jnp.pad(x, ((0, n_pad - n), (0, 0))).reshape(rows_pad, 2 * _LANES)

    params = jnp.concatenate(
        [weight.reshape(2).astype(jnp.float32), bias.astype(jnp.float32)]
    )  # (3,) = [w0, w1, b] -> SMEM scalars

    itemsize_in = jnp.dtype(x.dtype).itemsize
    itemsize_out = jnp.dtype(out_dtype).itemsize
    cost = pl.CostEstimate(
        flops=4 * n,
        transcendentals=0,
        bytes_accessed=n * (_IN_FEATURES * itemsize_in + itemsize_out),
    )

    out_slab = pl.pallas_call(
        _linear_kernel,
        out_shape=jax.ShapeDtypeStruct((rows_pad, _LANES), out_dtype),
        grid_spec=pltpu.PrefetchScalarGridSpec(
            num_scalar_prefetch=0,
            grid=(rows_pad // rb,),
            in_specs=[
                # weight/bias scalars: whole (3,) array in SMEM, no tiling.
                pl.BlockSpec(memory_space=pltpu.MemorySpace.SMEM),
                # x slab: (rb, 256) tile per grid step, double-buffered DMA.
                pl.BlockSpec((rb, 2 * _LANES), lambda i: (i, 0)),
            ],
            out_specs=pl.BlockSpec((rb, _LANES), lambda i: (i, 0)),
        ),
        compiler_params=pltpu.CompilerParams(
            dimension_semantics=("parallel",),       # no cross-step carry
            vmem_limit_bytes=32 * 1024 * 1024,       # headroom for rb sweeps
        ),
        cost_estimate=cost,
    )(params, x_slab)

    # Slab -> [N, 1].  Pure reshapes when n == n_pad; otherwise a contiguous
    # prefix slice that XLA can fuse into the consumer.
    return out_slab.reshape(n_pad)[:n].reshape(n, 1)


if __name__ == "__main__":
    key = jax.random.PRNGKey(0)
    kx, kw, kb, kx2 = jax.random.split(key, 4)

    # Deterministic synthetic params for nn.Linear(2, 1): weight (1, 2), bias (1,).
    # Quantize params/inputs to bf16-exact grids so the numerical check is
    # independent of the MXU's f32 input handling on any TPU generation.
    bound = 1.0 / jnp.sqrt(2.0)
    weight = jnp.round(
        jax.random.uniform(kw, (1, 2), jnp.float32, -bound, bound) * 256) / 256
    bias = jnp.round(
        jax.random.uniform(kb, (1,), jnp.float32, -bound, bound) * 256) / 256

    def ref_fn(xs):  # exact elementwise reference (same math as torch fc(x))
        return xs[:, :1] * weight[0, 0] + xs[:, 1:] * weight[0, 1] + bias[0]

    # Small batch of 2-D points.
    x = jnp.round(jax.random.normal(kx, (8, 2), jnp.float32) * 64) / 64
    out = jax.block_until_ready(linear_separator(x, weight, bias))
    assert out.shape == (8, 1) and out.dtype == x.dtype
    assert jnp.allclose(out, ref_fn(x), atol=1e-5, rtol=1e-5)

    # Ragged batch driving a multi-step grid (exercises tail padding + pipeline).
    x2 = jnp.round(jax.random.normal(kx2, (3000, 2), jnp.float32) * 64) / 64
    out2 = jax.block_until_ready(linear_separator(x2, weight, bias, block_rows=8))
    assert out2.shape == (3000, 1)
    assert jnp.allclose(out2, ref_fn(x2), atol=1e-5, rtol=1e-5)

    print("KERNEL_OK")
</pallas_src>

<mosaic_0001>
module attributes {stable_mosaic.version = 11 : i64} {
  func.func @_linear_kernel(%arg0: i32, %arg1: memref<3xf32, #tpu.memory_space<smem>>, %arg2: memref<8x256xf32, #tpu.memory_space<vmem>>, %arg3: memref<8x128xf32, #tpu.memory_space<vmem>>) attributes {dimension_semantics = [#tpu.dimension_semantics<parallel>], iteration_bounds = array<i64: 1>, scalar_prefetch = 0 : i64, scratch_operands = 0 : i64, tpu.core_type = #tpu.core_type<tc>, window_params = [{transform_indices = @transform_0, window_bounds = array<i64: 3>}, {transform_indices = @transform_1, window_bounds = array<i64: 8, 256>}, {transform_indices = @transform_2, window_bounds = array<i64: 8, 128>}]} {
    %c0 = arith.constant 0 : index
    %0 = memref.load %arg1[%c0] : memref<3xf32, #tpu.memory_space<smem>>
    %c1 = arith.constant 1 : index
    %1 = memref.load %arg1[%c1] : memref<3xf32, #tpu.memory_space<smem>>
    %c2 = arith.constant 2 : index
    %2 = memref.load %arg1[%c2] : memref<3xf32, #tpu.memory_space<smem>>
    %3 = tpu.iota {dimensions = array<i32: 0>} : vector<256x128xi32>
    %4 = tpu.iota {dimensions = array<i32: 1>} : vector<256x128xi32>
    %c2_i32 = arith.constant 2 : i32
    %5 = vector.broadcast %c2_i32 : i32 to vector<256x128xi32>
    %6 = arith.muli %5, %4 : vector<256x128xi32>
    %7 = arith.cmpi eq, %3, %6 : vector<256x128xi32>
    %cst = arith.constant 0.000000e+00 : f32
    %8 = vector.broadcast %0 : f32 to vector<256x128xf32>
    %9 = vector.broadcast %cst : f32 to vector<256x128xf32>
    %10 = arith.select %7, %8, %9 : vector<256x128xi1>, vector<256x128xf32>
    %c2_i32_0 = arith.constant 2 : i32
    %11 = vector.broadcast %c2_i32_0 : i32 to vector<256x128xi32>
    %12 = arith.muli %11, %4 : vector<256x128xi32>
    %c1_i32 = arith.constant 1 : i32
    %13 = vector.broadcast %c1_i32 : i32 to vector<256x128xi32>
    %14 = arith.addi %12, %13 : vector<256x128xi32>
    %15 = arith.cmpi eq, %3, %14 : vector<256x128xi32>
    %16 = vector.broadcast %1 : f32 to vector<256x128xf32>
    %17 = arith.select %15, %16, %10 : vector<256x128xi1>, vector<256x128xf32>
    %c0_1 = arith.constant 0 : index
    %c0_2 = arith.constant 0 : index
    %18 = vector.load %arg2[%c0_1, %c0_2] : memref<8x256xf32, #tpu.memory_space<vmem>>, vector<8x256xf32>
    %cst_3 = arith.constant dense<0.000000e+00> : vector<8x128xf32>
    %19 = tpu.matmul %18, %17, %cst_3 {dimension_numbers = #tpu.dot_dimension_numbers<[1], [0], [0], [1], [0, 0, 1, 1], [], []>} : vector<8x256xf32>, vector<256x128xf32>, vector<8x128xf32> -> vector<8x128xf32>
    %20 = vector.broadcast %2 : f32 to vector<8x128xf32>
    %21 = arith.addf %19, %20 : vector<8x128xf32>
    %c0_4 = arith.constant 0 : index
    %c0_5 = arith.constant 0 : index
    %22 = vector.load %arg3[%c0_4, %c0_5] : memref<8x128xf32, #tpu.memory_space<vmem>>, vector<8x128xf32>
    tpu.vector_store %arg3[%c0_4, %c0_5], %21 {strides = array<i32>} : memref<8x128xf32, #tpu.memory_space<vmem>>, vector<8x128xf32>,
    return
  }
  func.func @transform_0(%arg0: i32) -> i32 {
    %c0_i32 = arith.constant 0 : i32
    %c0_i32_0 = arith.constant 0 : i32
    return %c0_i32 : i32
  }
  func.func @transform_1(%arg0: i32) -> (i32, i32) {
    %c0_i32 = arith.constant 0 : i32
    %c0_i32_0 = arith.constant 0 : i32
    return %arg0, %c0_i32 : i32, i32
  }
  func.func @transform_2(%arg0: i32) -> (i32, i32) {
    %c0_i32 = arith.constant 0 : i32
    %c0_i32_0 = arith.constant 0 : i32
    return %arg0, %c0_i32 : i32, i32
  }
}

</mosaic_0001>

<bundles_post_ra>
// kernel: tpu_custom_call.1
= control target key start
LH: loop header
LB: loop body
LE: loop exit
PB: predicated region body
PF: predicated region fallthrough
CT: control target
= control target key end

     0   :  { %7 = vsyncpa [#allocation5], 0  ;;  %s653_s0 = inlined_call_operand.hbm [shape: f32[3], index: 0, kind: input, shape index: {}]   ;;  %s654_s1 = inlined_call_operand.hbm [shape: f32[8,256], index: 1, kind: input, shape index: {}]   ;;  %s655_s2 = inlined_call_operand.hbm [shape: f32[8,128], index: 2, kind: output, shape index: {}]  }
   0x1   :  { %8 = vsyncpa [#allocation3], 0 }
   0x2   :  { %9 = vsyncpa [#allocation4], 0  ;;  %s367_s11 = scalar_lea.hbm %s653_s0, 16 }
   0x3   :  { %p368_p0 = scmp.ne.s32.totalorder %s653_s0, %s367_s11  ;;  %p371_p1 = scmp.lt.u32.totalorder %s367_s11, %s653_s0 }
   0x5   :  { %p373_p2 = pnand %p371_p1, %p368_p0 }
   0x7   :  { %376 = shalt.err (!%p373_p2)
}
   0x8   :  { %s427_s16 = smov [#allocation2]   ;;  %s428_s19 = smov [#allocation6]  }
   0x9   :  { %17 = dma.hbm_to_smem %s653_s0, 16, %s427_s16, [#allocation5]  }
   0xa   :  { %s24_s20 = sshll.u32 %s428_s19, 4  ;;  %s377_s23 = scalar_lea.hbm %s654_s1, 256  ;;  %s25_s20 = int_to_ptr.vmem [resolvable:$true] %s24_s20 }
   0xb   :  { %p378_p3 = scmp.ne.s32.totalorder %s654_s1, %s377_s23  ;;  %p381_p4 = scmp.lt.u32.totalorder %s377_s23, %s654_s1 }
   0xd   :  { %p383_p5 = pnand %p381_p4, %p378_p3 }
   0xf   :  { %386 = shalt.err (!%p383_p5)
}
  0x10   :  { %s387_s28 = scalar_lea.vmem %s25_s20, 256  ;;  %p392_p7 = scmp.lt.s32.totalorder %s25_s20, %s25_s20 }
  0x11   :  { %p388_p6 = scmp.ne.s32.totalorder %s25_s20, %s387_s28  ;;  %p393_p8 = scmp.lt.s32.totalorder %s387_s28, %s387_s28 }
  0x13   :  { %p394_p9 = por %p393_p8, %p392_p7 }
  0x15   :  { %p395_p10 = pnand %p394_p9, %p388_p6 }
  0x17   :  { %398 = shalt.err (!%p395_p10)
}
  0x18   :  { %27 = dma.hbm_to_vmem [thread:$0]  %s654_s1, 256, %s25_s20, [#allocation3]  }
  0x19   :  { %421 = dma.done.wait [#allocation5], 16  }
  0x1a   :  { %422 = vsyncadd [#allocation5], 4294967280 }
  0x1b   :  { %423 = dma.done.wait [#allocation3], 256  }
  0x1c   :  { %424 = vsyncadd [#allocation3], 4294967040 }
  0x1d   :  { %34 = sfence }
  0x1e   :  { %s35_s30 = sld [smem:[#allocation2]]  ;;  %s295_s3 = sld [smem:[#allocation2 + $0x1]]  ;;  %v38_v0 = vlaneseq  ;;  %v206_v1 = vld [vmem:[#allocation6 + $0x8] sm:$0xff] }
  0x1f   :  { %272 = vmatprep.mubr.f32.mxu0 %v206_v1  ;;  %s296_s1 = sld [smem:[#allocation2 + $0x2]]  ;;  %s429_s4 = smov [#allocation7]  }
  0x20   :  { %v469_v2 = vshrl.u32 %v38_v0, 7  ;;  %v72_v3 = vand.u32 127, %v38_v0  ;;  %s285_s5 = sshll.u32 %s429_s4, 4  ;;  %s286_s5 = int_to_ptr.vmem [resolvable:$true] %s285_s5 }
  0x21   :  { %s399_s6 = scalar_lea.vmem %s286_s5, 128  ;;  %p404_p12 = scmp.lt.s32.totalorder %s286_s5, %s286_s5 }
  0x22   :  { %v55_v4 = vadd.s32 128, %v469_v2  ;;  %v56_v5 = vadd.s32 136, %v469_v2  ;;  %v473_v6 = vmul.u32 2, %v72_v3  ;;  %v40_v7 = vadd.s32 8, %v469_v2  ;;  %p400_p11 = scmp.ne.s32.totalorder %s286_s5, %s399_s6  ;;  %p405_p13 = scmp.lt.s32.totalorder %s399_s6, %s399_s6 }
  0x23   :  { %v57_v8 = vadd.s32 144, %v469_v2  ;;  %v58_v9 = vadd.s32 152, %v469_v2  ;;  %v41_v10 = vadd.s32 16, %v469_v2  ;;  %v42_v11 = vadd.s32 24, %v469_v2 }
  0x24   :  { %vm90_vm0 = vcmp.eq.s32.totalorder %v55_v4, %v473_v6  ;;  %vm91_vm1 = vcmp.eq.s32.totalorder %v56_v5, %v473_v6  ;;  %v482_v12 = vstv %s35_s30  ;;  %v485_v13 = vadd.s32 1, %v473_v6  ;;  %p406_p0 = por %p405_p13, %p404_p12 }
  0x25   :  { %v123_v14 = vsel %vm90_vm0, %v482_v12, 0.0  ;;  %v124_v15 = vsel %vm91_vm1, %v482_v12, 0.0  ;;  %v489_v16 = vstv %s295_s3  ;;  %vm74_vm2 = vcmp.eq.s32.totalorder %v469_v2, %v473_v6 }
  0x26   :  { %vm156_vm3 = vcmp.eq.s32.totalorder %v55_v4, %v485_v13  ;;  %vm157_vm4 = vcmp.eq.s32.totalorder %v56_v5, %v485_v13  ;;  %vm75_vm5 = vcmp.eq.s32.totalorder %v40_v7, %v473_v6  ;;  %v107_v17 = vsel %vm74_vm2, %v482_v12, 0.0  ;;  %p407_p1 = pnand %p406_p0, %p400_p11 }
  0x27   :  { %v189_v18 = vsel %vm156_vm3, %v489_v16, %v123_v14  ;;  %v190_v19 = vsel %vm157_vm4, %v489_v16, %v124_v15  ;;  %v108_v20 = vsel %vm75_vm5, %v482_v12, 0.0  ;;  %vm140_vm6 = vcmp.eq.s32.totalorder %v469_v2, %v485_v13 }
  0x28   :  { %v332_v21 = vpack.c.bf16 %v190_v19, %v189_v18  ;;  %vm141_vm7 = vcmp.eq.s32.totalorder %v40_v7, %v485_v13  ;;  %v173_v22 = vsel %vm140_vm6, %v489_v16, %v107_v17  ;;  %vm92_vm8 = vcmp.eq.s32.totalorder %v57_v8, %v473_v6 }
  0x29   :  { %v174_v23 = vsel %vm141_vm7, %v489_v16, %v108_v20  ;;  %vm93_vm9 = vcmp.eq.s32.totalorder %v58_v9, %v473_v6  ;;  %v125_v24 = vsel %vm92_vm8, %v482_v12, 0.0  ;;  %vm158_vm10 = vcmp.eq.s32.totalorder %v57_v8, %v485_v13 }
  0x2a   :  { %333 = vmatprep.subr.bf16.mxu0 %v332_v21  ;;  %v334_v25 = vpack.c.bf16 %v174_v23, %v173_v22  ;;  %v126_v26 = vsel %vm93_vm9, %v482_v12, 0.0  ;;  %vm159_vm11 = vcmp.eq.s32.totalorder %v58_v9, %v485_v13  ;;  %v191_v27 = vsel %vm158_vm10, %v489_v16, %v125_v24 }
  0x2b   :  { %v192_v28 = vsel %vm159_vm11, %v489_v16, %v126_v26  ;;  %vm76_vm12 = vcmp.eq.s32.totalorder %v41_v10, %v473_v6  ;;  %vm77_vm13 = vcmp.eq.s32.totalorder %v42_v11, %v473_v6  ;;  %vm142_vm14 = vcmp.eq.s32.totalorder %v41_v10, %v485_v13 }
  0x2c   :  { %335 = vmatpush3.bf16.msra.mxu0 %v334_v25  ;;  %v336_v29 = vpack.c.bf16 %v192_v28, %v191_v27  ;;  %v109_v30 = vsel %vm76_vm12, %v482_v12, 0.0  ;;  %v110_v31 = vsel %vm77_vm13, %v482_v12, 0.0  ;;  %vm143_vm15 = vcmp.eq.s32.totalorder %v42_v11, %v485_v13 }
  0x2d   :  { %v175_v32 = vsel %vm142_vm14, %v489_v16, %v109_v30  ;;  %v176_v33 = vsel %vm143_vm15, %v489_v16, %v110_v31  ;;  %v59_v34 = vadd.s32 160, %v469_v2  ;;  %v60_v35 = vadd.s32 168, %v469_v2 }
  0x2e   :  { %337 = vmatprep.subr.bf16.mxu0 %v336_v29  ;;  %v338_v36 = vpack.c.bf16 %v176_v33, %v175_v32  ;;  %v43_v37 = vadd.s32 32, %v469_v2  ;;  %v44_v38 = vadd.s32 40, %v469_v2  ;;  %v61_v39 = vadd.s32 176, %v469_v2 }
  0x2f   :  { %vm94_vm0 = vcmp.eq.s32.totalorder %v59_v34, %v473_v6  ;;  %vm95_vm1 = vcmp.eq.s32.totalorder %v60_v35, %v473_v6  ;;  %vm160_vm2 = vcmp.eq.s32.totalorder %v59_v34, %v485_v13  ;;  %vm161_vm3 = vcmp.eq.s32.totalorder %v60_v35, %v485_v13 }
  0x30   :  { %339 = vmatpush3.bf16.msra.mxu0 %v338_v36  ;;  %v127_v40 = vsel %vm94_vm0, %v482_v12, 0.0  ;;  %v128_v41 = vsel %vm95_vm1, %v482_v12, 0.0  ;;  %vm78_vm4 = vcmp.eq.s32.totalorder %v43_v37, %v473_v6  ;;  %vm79_vm5 = vcmp.eq.s32.totalorder %v44_v38, %v473_v6 }
  0x31   :  { %v193_v42 = vsel %vm160_vm2, %v489_v16, %v127_v40  ;;  %v194_v43 = vsel %vm161_vm3, %v489_v16, %v128_v41  ;;  %v111_v44 = vsel %vm78_vm4, %v482_v12, 0.0  ;;  %v112_v45 = vsel %vm79_vm5, %v482_v12, 0.0 }
  0x32   :  { %v340_v46 = vpack.c.bf16 %v194_v43, %v193_v42  ;;  %vm144_vm6 = vcmp.eq.s32.totalorder %v43_v37, %v485_v13  ;;  %vm145_vm7 = vcmp.eq.s32.totalorder %v44_v38, %v485_v13  ;;  %v62_v47 = vadd.s32 184, %v469_v2 }
  0x33   :  { %v177_v48 = vsel %vm144_vm6, %v489_v16, %v111_v44  ;;  %v178_v49 = vsel %vm145_vm7, %v489_v16, %v112_v45  ;;  %vm96_vm8 = vcmp.eq.s32.totalorder %v61_v39, %v473_v6  ;;  %vm162_vm9 = vcmp.eq.s32.totalorder %v61_v39, %v485_v13 }
  0x34   :  { %341 = vmatprep.subr.bf16.mxu0 %v340_v46  ;;  %v342_v50 = vpack.c.bf16 %v178_v49, %v177_v48  ;;  %vm97_vm10 = vcmp.eq.s32.totalorder %v62_v47, %v473_v6  ;;  %v129_v51 = vsel %vm96_vm8, %v482_v12, 0.0  ;;  %vm163_vm11 = vcmp.eq.s32.totalorder %v62_v47, %v485_v13 }
  0x35   :  { %v130_v52 = vsel %vm97_vm10, %v482_v12, 0.0  ;;  %v195_v53 = vsel %vm162_vm9, %v489_v16, %v129_v51  ;;  %v45_v54 = vadd.s32 48, %v469_v2  ;;  %v46_v55 = vadd.s32 56, %v469_v2 }
  0x36   :  { %343 = vmatpush3.bf16.msra.mxu0 %v342_v50  ;;  %v196_v56 = vsel %vm163_vm11, %v489_v16, %v130_v52  ;;  %v63_v57 = vadd.s32 192, %v469_v2  ;;  %v64_v58 = vadd.s32 200, %v469_v2  ;;  %v47_v59 = vadd.s32 64, %v469_v2 }
  0x37   :  { %v344_v60 = vpack.c.bf16 %v196_v56, %v195_v53  ;;  %vm80_vm12 = vcmp.eq.s32.totalorder %v45_v54, %v473_v6  ;;  %vm81_vm13 = vcmp.eq.s32.totalorder %v46_v55, %v473_v6  ;;  %vm146_vm14 = vcmp.eq.s32.totalorder %v45_v54, %v485_v13 }
  0x38   :  { %v113_v61 = vsel %vm80_vm12, %v482_v12, 0.0  ;;  %v114_v62 = vsel %vm81_vm13, %v482_v12, 0.0  ;;  %vm147_vm15 = vcmp.eq.s32.totalorder %v46_v55, %v485_v13  ;;  %vm98_vm0 = vcmp.eq.s32.totalorder %v63_v57, %v473_v6 }
  0x39   :  { %345 = vmatprep.subr.bf16.mxu0 %v344_v60  ;;  %v179_v63 = vsel %vm146_vm14, %v489_v16, %v113_v61  ;;  %v180_v0 = vsel %vm147_vm15, %v489_v16, %v114_v62  ;;  %vm99_vm1 = vcmp.eq.s32.totalorder %v64_v58, %v473_v6  ;;  %v131_v1 = vsel %vm98_vm0, %v482_v12, 0.0 }
  0x3a   :  { %v346_v3 = vpack.c.bf16 %v180_v0, %v179_v63  ;;  %v132_v4 = vsel %vm99_vm1, %v482_v12, 0.0  ;;  %vm164_vm2 = vcmp.eq.s32.totalorder %v63_v57, %v485_v13  ;;  %vm165_vm3 = vcmp.eq.s32.totalorder %v64_v58, %v485_v13 }
  0x3b   :  { %v197_v5 = vsel %vm164_vm2, %v489_v16, %v131_v1  ;;  %v198_v7 = vsel %vm165_vm3, %v489_v16, %v132_v4  ;;  %v48_v8 = vadd.s32 72, %v469_v2  ;;  %vm82_vm4 = vcmp.eq.s32.totalorder %v47_v59, %v473_v6 }
  0x3c   :  { %347 = vmatpush3.bf16.msra.mxu0 %v346_v3  ;;  %v348_v9 = vpack.c.bf16 %v198_v7, %v197_v5  ;;  %v115_v10 = vsel %vm82_vm4, %v482_v12, 0.0  ;;  %vm148_vm5 = vcmp.eq.s32.totalorder %v47_v59, %v485_v13  ;;  %v65_v11 = vadd.s32 208, %v469_v2 }
  0x3d   :  { %vm83_vm6 = vcmp.eq.s32.totalorder %v48_v8, %v473_v6  ;;  %vm149_vm7 = vcmp.eq.s32.totalorder %v48_v8, %v485_v13  ;;  %v181_v14 = vsel %vm148_vm5, %v489_v16, %v115_v10  ;;  %v66_v15 = vadd.s32 216, %v469_v2 }
  0x3e   :  { %349 = vmatprep.subr.bf16.mxu0 %v348_v9  ;;  %v116_v17 = vsel %vm83_vm6, %v482_v12, 0.0  ;;  %vm100_vm8 = vcmp.eq.s32.totalorder %v65_v11, %v473_v6  ;;  %vm166_vm9 = vcmp.eq.s32.totalorder %v65_v11, %v485_v13  ;;  %v49_v18 = vadd.s32 80, %v469_v2 }
  0x3f   :  { %v182_v19 = vsel %vm149_vm7, %v489_v16, %v116_v17  ;;  %vm101_vm10 = vcmp.eq.s32.totalorder %v66_v15, %v473_v6  ;;  %v133_v20 = vsel %vm100_vm8, %v482_v12, 0.0  ;;  %vm167_vm11 = vcmp.eq.s32.totalorder %v66_v15, %v485_v13 }
  0x40   :  { %v350_v21 = vpack.c.bf16 %v182_v19, %v181_v14  ;;  %v134_v22 = vsel %vm101_vm10, %v482_v12, 0.0  ;;  %v199_v23 = vsel %vm166_vm9, %v489_v16, %v133_v20  ;;  %v50_v24 = vadd.s32 88, %v469_v2 }
  0x41   :  { %v200_v25 = vsel %vm167_vm11, %v489_v16, %v134_v22  ;;  %vm84_vm12 = vcmp.eq.s32.totalorder %v49_v18, %v473_v6  ;;  %vm150_vm13 = vcmp.eq.s32.totalorder %v49_v18, %v485_v13  ;;  %v67_v26 = vadd.s32 224, %v469_v2 }
  0x42   :  { %351 = vmatpush3.bf16.msra.mxu0 %v350_v21  ;;  %v352_v27 = vpack.c.bf16 %v200_v25, %v199_v23  ;;  %vm85_vm14 = vcmp.eq.s32.totalorder %v50_v24, %v473_v6  ;;  %v117_v28 = vsel %vm84_vm12, %v482_v12, 0.0  ;;  %vm151_vm15 = vcmp.eq.s32.totalorder %v50_v24, %v485_v13 }
  0x43   :  { %v118_v29 = vsel %vm85_vm14, %v482_v12, 0.0  ;;  %v183_v30 = vsel %vm150_vm13, %v489_v16, %v117_v28  ;;  %v68_v31 = vadd.s32 232, %v469_v2  ;;  %vm102_vm0 = vcmp.eq.s32.totalorder %v67_v26, %v473_v6 }
  0x44   :  { %353 = vmatprep.subr.bf16.mxu0 %v352_v27  ;;  %v184_v32 = vsel %vm151_vm15, %v489_v16, %v118_v29  ;;  %v135_v33 = vsel %vm102_vm0, %v482_v12, 0.0  ;;  %vm168_vm1 = vcmp.eq.s32.totalorder %v67_v26, %v485_v13  ;;  %v51_v34 = vadd.s32 96, %v469_v2 }
  0x45   :  { %v354_v35 = vpack.c.bf16 %v184_v32, %v183_v30  ;;  %vm103_vm2 = vcmp.eq.s32.totalorder %v68_v31, %v473_v6  ;;  %vm169_vm3 = vcmp.eq.s32.totalorder %v68_v31, %v485_v13  ;;  %v201_v36 = vsel %vm168_vm1, %v489_v16, %v135_v33 }
  0x46   :  { %v136_v37 = vsel %vm103_vm2, %v482_v12, 0.0  ;;  %v52_v38 = vadd.s32 104, %v469_v2  ;;  %vm86_vm4 = vcmp.eq.s32.totalorder %v51_v34, %v473_v6  ;;  %vm152_vm5 = vcmp.eq.s32.totalorder %v51_v34, %v485_v13 }
  0x47   :  { %355 = vmatpush3.bf16.msra.mxu0 %v354_v35  ;;  %v202_v39 = vsel %vm169_vm3, %v489_v16, %v136_v37  ;;  %v119_v40 = vsel %vm86_vm4, %v482_v12, 0.0  ;;  %v69_v41 = vadd.s32 240, %v469_v2  ;;  %v70_v42 = vadd.s32 248, %v469_v2 }
  0x48   :  { %v356_v43 = vpack.c.bf16 %v202_v39, %v201_v36  ;;  %vm87_vm6 = vcmp.eq.s32.totalorder %v52_v38, %v473_v6  ;;  %vm153_vm7 = vcmp.eq.s32.totalorder %v52_v38, %v485_v13  ;;  %v185_v44 = vsel %vm152_vm5, %v489_v16, %v119_v40 }
  0x49   :  { %v120_v45 = vsel %vm87_vm6, %v482_v12, 0.0  ;;  %vm104_vm8 = vcmp.eq.s32.totalorder %v69_v41, %v473_v6  ;;  %vm105_vm9 = vcmp.eq.s32.totalorder %v70_v42, %v473_v6  ;;  %vm170_vm10 = vcmp.eq.s32.totalorder %v69_v41, %v485_v13 }
  0x4a   :  { %357 = vmatprep.subr.bf16.mxu0 %v356_v43  ;;  %v186_v46 = vsel %vm153_vm7, %v489_v16, %v120_v45  ;;  %v137_v47 = vsel %vm104_vm8, %v482_v12, 0.0  ;;  %v138_v48 = vsel %vm105_vm9, %v482_v12, 0.0  ;;  %vm171_vm11 = vcmp.eq.s32.totalorder %v70_v42, %v485_v13 }
  0x4b   :  { %v358_v49 = vpack.c.bf16 %v186_v46, %v185_v44  ;;  %v203_v50 = vsel %vm170_vm10, %v489_v16, %v137_v47  ;;  %v204_v51 = vsel %vm171_vm11, %v489_v16, %v138_v48  ;;  %v53_v52 = vadd.s32 112, %v469_v2 }
  0x4c   :  { %v360_v53 = vpack.c.bf16 %v204_v51, %v203_v50  ;;  %v54_v54 = vadd.s32 120, %v469_v2  ;;  %v205_v2 = vld [vmem:[#allocation6] sm:$0xff]  ;;  %v207_v62 = vstv %s296_s1 }
  0x4d   :  { %359 = vmatpush3.bf16.msra.mxu0 %v358_v49  ;;  %vm88_vm12 = vcmp.eq.s32.totalorder %v53_v52, %v473_v6  ;;  %vm154_vm13 = vcmp.eq.s32.totalorder %v53_v52, %v485_v13 }
  0x4e   :  { %361 = vmatprep.subr.bf16.mxu0 %v360_v53  ;;  %vm89_vm14 = vcmp.eq.s32.totalorder %v54_v54, %v473_v6  ;;  %v121_v55 = vsel %vm88_vm12, %v482_v12, 0.0  ;;  %vm155_vm15 = vcmp.eq.s32.totalorder %v54_v54, %v485_v13 }
  0x4f   :  { %v122_v56 = vsel %vm89_vm14, %v482_v12, 0.0  ;;  %v187_v57 = vsel %vm154_vm13, %v489_v16, %v121_v55 }
  0x50   :  { %v188_v58 = vsel %vm155_vm15, %v489_v16, %v122_v56 }
  0x51   :  { %v362_v59 = vpack.c.bf16 %v188_v58, %v187_v57 }
  0x53   :  { %363 = vmatpush3.bf16.msra.mxu0 %v362_v59 }
  0x56   :  { %273 = vmatmul.mubr.f32.vlgmr.msra.gmra.mrb[0].mxu0 %v205_v2 }
 0x129   :  { %v329_v60 = vpop.f32.mrb[0].mxu0 }
 0x12a   :  { %v330_v61 = vpop.f32.mrb[1].mxu0 }
 0x12b   :  { %v331_v6 = vadd.f32 %v330_v61, %v329_v60 }
 0x12d   :  { %v275_v63 = vadd.f32 %v331_v6, %v207_v62 }
 0x12f   :  { %278 = vst [vmem:[#allocation7] sm:$0xff] %v275_v63 }
 0x130   :  { %410 = shalt.err (!%p407_p1)
}
 0x131   :  { %s411_s9 = scalar_lea.hbm %s655_s2, 128 }
 0x132   :  { %p412_p2 = scmp.ne.s32.totalorder %s655_s2, %s411_s9  ;;  %p415_p3 = scmp.lt.u32.totalorder %s411_s9, %s655_s2 }
 0x134   :  { %p417_p4 = pnand %p415_p3, %p412_p2 }
 0x136   :  { %420 = shalt.err (!%p417_p4)
}
 0x137   :  { %288 = dma.vmem_to_hbm [thread:$0]  %s286_s5, 128, %s655_s2, [#allocation4]  }
 0x138   :  { %425 = dma.done.wait [#allocation4], 128  }
 0x139   :  { %426 = vsyncadd [#allocation4], 4294967168 }
 0x13a   :  { %292 = vsyncpa [#allocation3], 1 }
 0x13b   :  { %293 = vsyncpa [#allocation4], 1 }
 0x13c   :  { %294 = vsyncpa [#allocation5], 1 }

</bundles_post_ra>
